<compile_context>
chip_gen: v7x
topology: tpu7x:2x2x1
jax: 0.10.0
libtpu: 0.0.40
codegen_flags: <defaults>
</compile_context>

<pallas_src>
import functools

import jax
import jax.numpy as jnp
from jax.experimental import pallas as pl
from jax.experimental.pallas import tpu as pltpu


# ----------------------------------------------------------------------------
# Pallas kernel: one grid step == one chunk of T_CHUNK Euler time steps.
# State [y; u] (stacked along sublanes, (2*TB, Dp)) carried in vregs within the
# chunk and in a VMEM scratch between chunks.
# ----------------------------------------------------------------------------
def _csode_kernel(dt_ref,                 # scalar-prefetch: dt (Tp,) in SMEM, dt[0] == 0
                  y0_ref,                 # (TB, Dp)   initial y (== initial u) for this batch tile
                  w1_ref, b1_ref,         # (Dp, 2H), (1, 2H)    fused layer-1 [w1f | w1g]
                  w2_ref, b2_ref,         # (2H, 2Dp), (1, 2Dp)  block-diag layer-2
                  sol_ref,                # out block (T_CHUNK, TB, Dp)
                  yu_vmem):               # VMEM scratch (2*TB, Dp): [y; u] carry between chunks
    t_chunk, tb, dp = sol_ref.shape
    two_tb = 2 * tb
    h2 = w1_ref.shape[1]                  # 2*H
    dp2 = w2_ref.shape[1]                 # 2*Dp
    c = pl.program_id(1)                  # time-chunk index (axis 0 is the batch tile)

    # Hoisted invariants: weights, bias broadcasts, row mask.  (The time loop is
    # unrolled, so per-iteration broadcasts would otherwise be re-emitted: JAX
    # does not CSE broadcast_in_dim.)
    w1 = w1_ref[...]
    w2 = w2_ref[...]
    b1 = jnp.broadcast_to(b1_ref[...], (two_tb, h2))
    b2 = jnp.broadcast_to(b2_ref[...], (two_tb, dp2))
    is_y_row = jax.lax.broadcasted_iota(jnp.int32, (two_tb, dp), 0) < tb

    @pl.when(c == 0)
    def _init():                          # state <- [y0; u0]  (u0 == y0 in this module)
        yu_vmem[pl.ds(0, tb), :] = y0_ref[...]
        yu_vmem[pl.ds(tb, tb), :] = y0_ref[...]

    def euler_step(yu, dt_j):
        # One fused Euler step on the stacked state [y; u]  (2*TB, Dp):
        #   hid = tanh([y;u] @ [w1f|w1g] + [b1f|b1g])                  (2*TB, 2H)
        #   out = hid @ blockdiag(w2f, w2g) + [b2f|b2g]                (2*TB, 2*Dp)
        #   func(y) lives in out[:TB, :Dp]; gfunc(u) lives in out[TB:, Dp:].
        hid = jnp.tanh(jnp.dot(yu, w1, preferred_element_type=jnp.float32) + b1)
        out = jnp.dot(hid, w2, preferred_element_type=jnp.float32) + b2
        f = out[:, :dp]                   # func head   (valid on the y rows)
        g = out[:, dp:]                   # gfunc head  (valid on the u rows); tile-aligned slice
        # Replicate gfunc(u) into the y half: roll the gfunc head up by TB sublanes
        # (XLU, off the VALU path) so rows [0:TB] of `udot_top` hold gfunc(u).
        udot_top = pltpu.roll(g, shift=tb, axis=0)
        delta = jnp.where(is_y_row, f + udot_top, g)
        return yu + dt_j * delta

    yu = yu_vmem[...]                     # load the carried state ONCE per chunk
    base = c * t_chunk

    if t_chunk <= 16:
        # Small chunk: static unroll; dt scalars pre-read from SMEM so the scalar
        # unit runs ahead of the serial vector dependency chain.
        dts = [dt_ref[base + j] for j in range(t_chunk)]
        for j in range(t_chunk):
            yu = euler_step(yu, dts[j])
            sol_ref[j] = yu[:tb]          # unmasked lane-dense store (Dp multiple of 128)
    else:
        # Large chunk: partially-unrolled fori_loop keeps code size / live ranges bounded.
        def body(j, carry):
            nxt = euler_step(carry, dt_ref[base + j])
            sol_ref[j] = nxt[:tb]
            return nxt
        yu = jax.lax.fori_loop(0, t_chunk, body, yu, unroll=8)

    yu_vmem[...] = yu                     # write the carry back ONCE per chunk


# ----------------------------------------------------------------------------
# Wrapper
# ----------------------------------------------------------------------------
@functools.partial(jax.jit, static_argnames=("augment_dim",))
def cs_neural_ode_forward(y0, t, params, augment_dim=2):
    """y0: (B, d_in) f32, t: (T,) f32, params: 8-tuple of MLP weights."""
    w1f, b1f, w2f, b2f, w1g, b1g, w2g, b2g = params
    B, d_in = y0.shape
    D = d_in + augment_dim
    H = w1f.shape[1]
    T = t.shape[0]

    Dp = -(-D // 128) * 128                     # lane-padded feature dim
    T_CHUNK = 8 if T <= 16 else 64              # static unroll vs fori_loop(unroll=8)
    Tp = -(-T // T_CHUNK) * T_CHUNK             # time padded to chunk multiple
    Bp = -(-B // 8) * 8                         # batch padded to sublane multiple
    TB = Bp if Bp <= 64 else 64                 # batch tile ("parallel" axis -> v7x megacore)
    Bp = -(-Bp // TB) * TB

    # Augmented + padded initial state (u0 == y0_aug; augmented & padded cols are 0).
    y0_aug = jnp.zeros((Bp, Dp), jnp.float32).at[:B, :d_in].set(y0.astype(jnp.float32))

    # Fused / lane-padded weights: one MXU op per layer for BOTH MLPs.
    w1cat = (jnp.zeros((Dp, 2 * H), jnp.float32)
             .at[:D, :H].set(w1f).at[:D, H:].set(w1g))              # (Dp, 2H)
    b1cat = jnp.concatenate([b1f, b1g], axis=1)                     # (1, 2H)
    w2blk = (jnp.zeros((2 * H, 2 * Dp), jnp.float32)
             .at[:H, :D].set(w2f).at[H:, Dp:Dp + D].set(w2g))       # (2H, 2Dp) block-diag
    b2cat = (jnp.zeros((1, 2 * Dp), jnp.float32)
             .at[:, :D].set(b2f).at[:, Dp:Dp + D].set(b2g))         # (1, 2Dp)

    # dt for global step s: dt[0] = 0 so step 0 reproduces sol[0] = y0 exactly;
    # padded steps also use dt = 0 (state frozen, rows sliced off below).
    dt_full = jnp.zeros((Tp,), jnp.float32)
    if T > 1:
        dt_full = dt_full.at[1:T].set(jnp.diff(t.astype(jnp.float32)))

    sol = pl.pallas_call(
        _csode_kernel,
        out_shape=jax.ShapeDtypeStruct((Tp, Bp, Dp), jnp.float32),
        grid_spec=pltpu.PrefetchScalarGridSpec(
            num_scalar_prefetch=1,                       # dt lives in SMEM
            grid=(Bp // TB, Tp // T_CHUNK),              # (batch tiles, time chunks)
            in_specs=[
                pl.BlockSpec((TB, Dp), lambda b, c, dts: (b, 0)),          # y0_aug
                pl.BlockSpec((Dp, 2 * H), lambda b, c, dts: (0, 0)),       # w1cat
                pl.BlockSpec((1, 2 * H), lambda b, c, dts: (0, 0)),        # b1cat
                pl.BlockSpec((2 * H, 2 * Dp), lambda b, c, dts: (0, 0)),   # w2blk
                pl.BlockSpec((1, 2 * Dp), lambda b, c, dts: (0, 0)),       # b2cat
            ],
            out_specs=pl.BlockSpec((T_CHUNK, TB, Dp), lambda b, c, dts: (c, b, 0)),
            scratch_shapes=[
                pltpu.VMEM((2 * TB, Dp), jnp.float32),   # [y; u] state carry
            ],
        ),
        compiler_params=pltpu.CompilerParams(
            dimension_semantics=("parallel", "arbitrary"),   # batch across cores; time is sequential
            vmem_limit_bytes=32 * 1024 * 1024,               # safe on v5e/v6e (128 MiB) and v7x (64 MiB)
        ),
    )(dt_full, y0_aug, w1cat, b1cat, w2blk, b2cat)

    # (Tp, Bp, Dp) -> (B, T, 2).  Negligible at these sizes; for production B/T,
    # emit (Bp, Tp, Dp) directly from the kernel to skip this extra HBM pass.
    return jnp.transpose(sol, (1, 0, 2))[:B, :T, :2]


# ----------------------------------------------------------------------------
# Pure-JAX reference (mirrors DynamicODESolver.integrate, linear-interp branch)
# ----------------------------------------------------------------------------
def reference_forward(y0, t, params, augment_dim=2):
    w1f, b1f, w2f, b2f, w1g, b1g, w2g, b2g = params
    B, _ = y0.shape
    y0_aug = jnp.concatenate([y0, jnp.zeros((B, augment_dim), y0.dtype)], -1)

    def mlp(x, w1, b1, w2, b2):
        return jnp.tanh(x @ w1 + b1) @ w2 + b2

    y, u = y0_aug, y0_aug
    sols = [y0_aug]
    for i in range(1, t.shape[0]):
        dt = t[i] - t[i - 1]
        udot = mlp(u, w1g, b1g, w2g, b2g)
        f = mlp(y, w1f, b1f, w2f, b2f)
        y = y + dt * (f + udot)
        u = u + dt * udot
        sols.append(y)
    sol = jnp.stack(sols, axis=0)               # (T, B, D)
    return jnp.transpose(sol, (1, 0, 2))[..., :2]


# ----------------------------------------------------------------------------
def init_params(key, D, H):
    """PyTorch-Linear-style uniform(-1/sqrt(fan_in), 1/sqrt(fan_in)) init."""
    ks = jax.random.split(key, 8)

    def lin(kw, kb, fan_in, fan_out):
        bound = 1.0 / jnp.sqrt(fan_in)
        w = jax.random.uniform(kw, (fan_in, fan_out), jnp.float32, -bound, bound)
        b = jax.random.uniform(kb, (1, fan_out), jnp.float32, -bound, bound)
        return w, b

    w1f, b1f = lin(ks[0], ks[1], D, H)
    w2f, b2f = lin(ks[2], ks[3], H, D)
    w1g, b1g = lin(ks[4], ks[5], D, H)
    w2g, b2g = lin(ks[6], ks[7], H, D)
    return (w1f, b1f, w2f, b2f, w1g, b1g, w2g, b2g)


if __name__ == "__main__":
    B, d_in, augment_dim, H, T = 4, 4, 2, 32, 8
    D = d_in + augment_dim

    key = jax.random.PRNGKey(0)
    k_y, k_p = jax.random.split(key)
    y0 = jax.random.normal(k_y, (B, d_in), jnp.float32)
    t = jnp.linspace(0.0, 1.0, T, dtype=jnp.float32)
    params = init_params(k_p, D, H)

    out = cs_neural_ode_forward(y0, t, params, augment_dim=augment_dim)
    out = jax.block_until_ready(out)

    ref = reference_forward(y0, t, params, augment_dim=augment_dim)
    assert out.shape == (B, T, 2), out.shape
    assert jnp.allclose(out, ref, atol=1e-5, rtol=1e-5), (
        float(jnp.max(jnp.abs(out - ref))))

    print("KERNEL_OK")
</pallas_src>

<mosaic_0001>
module attributes {stable_mosaic.version = 11 : i64} {
  func.func @_csode_kernel(%arg0: i32, %arg1: i32, %arg2: memref<8xf32, #tpu.memory_space<smem>>, %arg3: memref<8x128xf32, #tpu.memory_space<vmem>>, %arg4: memref<128x64xf32, #tpu.memory_space<vmem>>, %arg5: memref<1x64xf32, #tpu.memory_space<vmem>>, %arg6: memref<64x256xf32, #tpu.memory_space<vmem>>, %arg7: memref<1x256xf32, #tpu.memory_space<vmem>>, %arg8: memref<8x8x128xf32, #tpu.memory_space<vmem>>, %arg9: memref<16x128xf32, #tpu.memory_space<vmem>>) attributes {dimension_semantics = [#tpu.dimension_semantics<parallel>, #tpu.dimension_semantics<arbitrary>], iteration_bounds = array<i64: 1, 1>, scalar_prefetch = 1 : i64, scratch_operands = 1 : i64, tpu.core_type = #tpu.core_type<tc>, window_params = [{transform_indices = @transform_0, window_bounds = array<i64: 8, 128>}, {pipeline_mode = #tpu.pipeline_mode<synchronous>, transform_indices = @transform_1, window_bounds = array<i64: 128, 64>}, {pipeline_mode = #tpu.pipeline_mode<synchronous>, transform_indices = @transform_2, window_bounds = array<i64: 1, 64>}, {pipeline_mode = #tpu.pipeline_mode<synchronous>, transform_indices = @transform_3, window_bounds = array<i64: 64, 256>}, {pipeline_mode = #tpu.pipeline_mode<synchronous>, transform_indices = @transform_4, window_bounds = array<i64: 1, 256>}, {transform_indices = @transform_5, window_bounds = array<i64: 8, 8, 128>}]} {
    %c0 = arith.constant 0 : index
    %c0_0 = arith.constant 0 : index
    %0 = vector.load %arg4[%c0, %c0_0] : memref<128x64xf32, #tpu.memory_space<vmem>>, vector<128x64xf32>
    %c0_1 = arith.constant 0 : index
    %c0_2 = arith.constant 0 : index
    %1 = vector.load %arg6[%c0_1, %c0_2] : memref<64x256xf32, #tpu.memory_space<vmem>>, vector<64x256xf32>
    %c0_3 = arith.constant 0 : index
    %c0_4 = arith.constant 0 : index
    %2 = vector.load %arg5[%c0_3, %c0_4] : memref<1x64xf32, #tpu.memory_space<vmem>>, vector<1x64xf32>
    %3 = vector.shape_cast %2 : vector<1x64xf32> to vector<1x64xf32>
    %4 = vector.broadcast %3 : vector<1x64xf32> to vector<16x64xf32>
    %c0_5 = arith.constant 0 : index
    %c0_6 = arith.constant 0 : index
    %5 = vector.load %arg7[%c0_5, %c0_6] : memref<1x256xf32, #tpu.memory_space<vmem>>, vector<1x256xf32>
    %6 = vector.shape_cast %5 : vector<1x256xf32> to vector<1x256xf32>
    %7 = vector.broadcast %6 : vector<1x256xf32> to vector<16x256xf32>
    %8 = tpu.iota {dimensions = array<i32: 0>} : vector<16x128xi32>
    %c8_i32 = arith.constant 8 : i32
    %9 = vector.broadcast %c8_i32 : i32 to vector<16x128xi32>
    %10 = arith.cmpi slt, %8, %9 : vector<16x128xi32>
    %c0_i32 = arith.constant 0 : i32
    %11 = arith.cmpi eq, %arg1, %c0_i32 : i32
    %12 = arith.extui %11 : i1 to i32
    %c0_i32_7 = arith.constant 0 : i32
    %13 = arith.cmpi ne, %12, %c0_i32_7 : i32
    scf.if %13 {
      %c0_54 = arith.constant 0 : index
      %c0_55 = arith.constant 0 : index
      %177 = vector.load %arg3[%c0_54, %c0_55] : memref<8x128xf32, #tpu.memory_space<vmem>>, vector<8x128xf32>
      %c0_56 = arith.constant 0 : index
      %c0_57 = arith.constant 0 : index
      %178 = vector.load %arg9[%c0_56, %c0_57] : memref<16x128xf32, #tpu.memory_space<vmem>>, vector<8x128xf32>
      tpu.vector_store %arg9[%c0_56, %c0_57], %177 {strides = array<i32>} : memref<16x128xf32, #tpu.memory_space<vmem>>, vector<8x128xf32>,
      %c0_58 = arith.constant 0 : index
      %c0_59 = arith.constant 0 : index
      %179 = vector.load %arg3[%c0_58, %c0_59] : memref<8x128xf32, #tpu.memory_space<vmem>>, vector<8x128xf32>
      %c8 = arith.constant 8 : index
      %c0_60 = arith.constant 0 : index
      %180 = vector.load %arg9[%c8, %c0_60] : memref<16x128xf32, #tpu.memory_space<vmem>>, vector<8x128xf32>
      tpu.vector_store %arg9[%c8, %c0_60], %179 {strides = array<i32>} : memref<16x128xf32, #tpu.memory_space<vmem>>, vector<8x128xf32>,
    } else {
    }
    %c0_8 = arith.constant 0 : index
    %c0_9 = arith.constant 0 : index
    %14 = vector.load %arg9[%c0_8, %c0_9] : memref<16x128xf32, #tpu.memory_space<vmem>>, vector<16x128xf32>
    %c8_i32_10 = arith.constant 8 : i32
    %15 = arith.muli %arg1, %c8_i32_10 : i32
    %c0_i32_11 = arith.constant 0 : i32
    %16 = arith.addi %15, %c0_i32_11 : i32
    %17 = arith.index_cast %16 : i32 to index
    %18 = memref.load %arg2[%17] : memref<8xf32, #tpu.memory_space<smem>>
    %c1_i32 = arith.constant 1 : i32
    %19 = arith.addi %15, %c1_i32 : i32
    %20 = arith.index_cast %19 : i32 to index
    %21 = memref.load %arg2[%20] : memref<8xf32, #tpu.memory_space<smem>>
    %c2_i32 = arith.constant 2 : i32
    %22 = arith.addi %15, %c2_i32 : i32
    %23 = arith.index_cast %22 : i32 to index
    %24 = memref.load %arg2[%23] : memref<8xf32, #tpu.memory_space<smem>>
    %c3_i32 = arith.constant 3 : i32
    %25 = arith.addi %15, %c3_i32 : i32
    %26 = arith.index_cast %25 : i32 to index
    %27 = memref.load %arg2[%26] : memref<8xf32, #tpu.memory_space<smem>>
    %c4_i32 = arith.constant 4 : i32
    %28 = arith.addi %15, %c4_i32 : i32
    %29 = arith.index_cast %28 : i32 to index
    %30 = memref.load %arg2[%29] : memref<8xf32, #tpu.memory_space<smem>>
    %c5_i32 = arith.constant 5 : i32
    %31 = arith.addi %15, %c5_i32 : i32
    %32 = arith.index_cast %31 : i32 to index
    %33 = memref.load %arg2[%32] : memref<8xf32, #tpu.memory_space<smem>>
    %c6_i32 = arith.constant 6 : i32
    %34 = arith.addi %15, %c6_i32 : i32
    %35 = arith.index_cast %34 : i32 to index
    %36 = memref.load %arg2[%35] : memref<8xf32, #tpu.memory_space<smem>>
    %c7_i32 = arith.constant 7 : i32
    %37 = arith.addi %15, %c7_i32 : i32
    %38 = arith.index_cast %37 : i32 to index
    %39 = memref.load %arg2[%38] : memref<8xf32, #tpu.memory_space<smem>>
    %cst = arith.constant dense<0.000000e+00> : vector<16x64xf32>
    %40 = tpu.matmul %14, %0, %cst {dimension_numbers = #tpu.dot_dimension_numbers<[1], [0], [0], [1], [0, 0, 1, 1], [], []>} : vector<16x128xf32>, vector<128x64xf32>, vector<16x64xf32> -> vector<16x64xf32>
    %41 = arith.addf %40, %4 : vector<16x64xf32>
    %42 = math.tanh %41 : vector<16x64xf32>
    %cst_12 = arith.constant dense<0.000000e+00> : vector<16x256xf32>
    %43 = tpu.matmul %42, %1, %cst_12 {dimension_numbers = #tpu.dot_dimension_numbers<[1], [0], [0], [1], [0, 0, 1, 1], [], []>} : vector<16x64xf32>, vector<64x256xf32>, vector<16x256xf32> -> vector<16x256xf32>
    %44 = arith.addf %43, %7 : vector<16x256xf32>
    %45 = vector.extract_strided_slice %44 {offsets = [0, 0], sizes = [16, 128], strides = [1, 1]} : vector<16x256xf32> to vector<16x128xf32>
    %46 = vector.extract_strided_slice %44 {offsets = [0, 128], sizes = [16, 128], strides = [1, 1]} : vector<16x256xf32> to vector<16x128xf32>
    %c8_i32_13 = arith.constant 8 : i32
    %47 = tpu.dynamic_rotate %46 by %c8_i32_13 dim 0 : vector<16x128xf32>, i32 -> vector<16x128xf32>
    %48 = arith.addf %45, %47 : vector<16x128xf32>
    %49 = arith.select %10, %48, %46 : vector<16x128xi1>, vector<16x128xf32>
    %50 = vector.broadcast %18 : f32 to vector<16x128xf32>
    %51 = arith.mulf %50, %49 : vector<16x128xf32>
    %52 = arith.addf %14, %51 : vector<16x128xf32>
    %53 = vector.extract_strided_slice %52 {offsets = [0, 0], sizes = [8, 128], strides = [1, 1]} : vector<16x128xf32> to vector<8x128xf32>
    %c0_14 = arith.constant 0 : index
    %c0_15 = arith.constant 0 : index
    %c0_16 = arith.constant 0 : index
    %54 = vector.load %arg8[%c0_14, %c0_15, %c0_16] : memref<8x8x128xf32, #tpu.memory_space<vmem>>, vector<1x8x128xf32>
    %55 = vector.shape_cast %54 : vector<1x8x128xf32> to vector<8x128xf32>
    %56 = vector.shape_cast %53 : vector<8x128xf32> to vector<1x8x128xf32>
    tpu.vector_store %arg8[%c0_14, %c0_15, %c0_16], %56 {strides = array<i32>} : memref<8x8x128xf32, #tpu.memory_space<vmem>>, vector<1x8x128xf32>,
    %cst_17 = arith.constant dense<0.000000e+00> : vector<16x64xf32>
    %57 = tpu.matmul %52, %0, %cst_17 {dimension_numbers = #tpu.dot_dimension_numbers<[1], [0], [0], [1], [0, 0, 1, 1], [], []>} : vector<16x128xf32>, vector<128x64xf32>, vector<16x64xf32> -> vector<16x64xf32>
    %58 = arith.addf %57, %4 : vector<16x64xf32>
    %59 = math.tanh %58 : vector<16x64xf32>
    %cst_18 = arith.constant dense<0.000000e+00> : vector<16x256xf32>
    %60 = tpu.matmul %59, %1, %cst_18 {dimension_numbers = #tpu.dot_dimension_numbers<[1], [0], [0], [1], [0, 0, 1, 1], [], []>} : vector<16x64xf32>, vector<64x256xf32>, vector<16x256xf32> -> vector<16x256xf32>
    %61 = arith.addf %60, %7 : vector<16x256xf32>
    %62 = vector.extract_strided_slice %61 {offsets = [0, 0], sizes = [16, 128], strides = [1, 1]} : vector<16x256xf32> to vector<16x128xf32>
    %63 = vector.extract_strided_slice %61 {offsets = [0, 128], sizes = [16, 128], strides = [1, 1]} : vector<16x256xf32> to vector<16x128xf32>
    %c8_i32_19 = arith.constant 8 : i32
    %64 = tpu.dynamic_rotate %63 by %c8_i32_19 dim 0 : vector<16x128xf32>, i32 -> vector<16x128xf32>
    %65 = arith.addf %62, %64 : vector<16x128xf32>
    %66 = arith.select %10, %65, %63 : vector<16x128xi1>, vector<16x128xf32>
    %67 = vector.broadcast %21 : f32 to vector<16x128xf32>
    %68 = arith.mulf %67, %66 : vector<16x128xf32>
    %69 = arith.addf %52, %68 : vector<16x128xf32>
    %70 = vector.extract_strided_slice %69 {offsets = [0, 0], sizes = [8, 128], strides = [1, 1]} : vector<16x128xf32> to vector<8x128xf32>
    %c1 = arith.constant 1 : index
    %c0_20 = arith.constant 0 : index
    %c0_21 = arith.constant 0 : index
    %71 = vector.load %arg8[%c1, %c0_20, %c0_21] : memref<8x8x128xf32, #tpu.memory_space<vmem>>, vector<1x8x128xf32>
    %72 = vector.shape_cast %71 : vector<1x8x128xf32> to vector<8x128xf32>
    %73 = vector.shape_cast %70 : vector<8x128xf32> to vector<1x8x128xf32>
    tpu.vector_store %arg8[%c1, %c0_20, %c0_21], %73 {strides = array<i32>} : memref<8x8x128xf32, #tpu.memory_space<vmem>>, vector<1x8x128xf32>,
    %cst_22 = arith.constant dense<0.000000e+00> : vector<16x64xf32>
    %74 = tpu.matmul %69, %0, %cst_22 {dimension_numbers = #tpu.dot_dimension_numbers<[1], [0], [0], [1], [0, 0, 1, 1], [], []>} : vector<16x128xf32>, vector<128x64xf32>, vector<16x64xf32> -> vector<16x64xf32>
    %75 = arith.addf %74, %4 : vector<16x64xf32>
    %76 = math.tanh %75 : vector<16x64xf32>
    %cst_23 = arith.constant dense<0.000000e+00> : vector<16x256xf32>
    %77 = tpu.matmul %76, %1, %cst_23 {dimension_numbers = #tpu.dot_dimension_numbers<[1], [0], [0], [1], [0, 0, 1, 1], [], []>} : vector<16x64xf32>, vector<64x256xf32>, vector<16x256xf32> -> vector<16x256xf32>
    %78 = arith.addf %77, %7 : vector<16x256xf32>
    %79 = vector.extract_strided_slice %78 {offsets = [0, 0], sizes = [16, 128], strides = [1, 1]} : vector<16x256xf32> to vector<16x128xf32>
    %80 = vector.extract_strided_slice %78 {offsets = [0, 128], sizes = [16, 128], strides = [1, 1]} : vector<16x256xf32> to vector<16x128xf32>
    %c8_i32_24 = arith.constant 8 : i32
    %81 = tpu.dynamic_rotate %80 by %c8_i32_24 dim 0 : vector<16x128xf32>, i32 -> vector<16x128xf32>
    %82 = arith.addf %79, %81 : vector<16x128xf32>
    %83 = arith.select %10, %82, %80 : vector<16x128xi1>, vector<16x128xf32>
    %84 = vector.broadcast %24 : f32 to vector<16x128xf32>
    %85 = arith.mulf %84, %83 : vector<16x128xf32>
    %86 = arith.addf %69, %85 : vector<16x128xf32>
    %87 = vector.extract_strided_slice %86 {offsets = [0, 0], sizes = [8, 128], strides = [1, 1]} : vector<16x128xf32> to vector<8x128xf32>
    %c2 = arith.constant 2 : index
    %c0_25 = arith.constant 0 : index
    %c0_26 = arith.constant 0 : index
    %88 = vector.load %arg8[%c2, %c0_25, %c0_26] : memref<8x8x128xf32, #tpu.memory_space<vmem>>, vector<1x8x128xf32>
    %89 = vector.shape_cast %88 : vector<1x8x128xf32> to vector<8x128xf32>
    %90 = vector.shape_cast %87 : vector<8x128xf32> to vector<1x8x128xf32>
    tpu.vector_store %arg8[%c2, %c0_25, %c0_26], %90 {strides = array<i32>} : memref<8x8x128xf32, #tpu.memory_space<vmem>>, vector<1x8x128xf32>,
    %cst_27 = arith.constant dense<0.000000e+00> : vector<16x64xf32>
    %91 = tpu.matmul %86, %0, %cst_27 {dimension_numbers = #tpu.dot_dimension_numbers<[1], [0], [0], [1], [0, 0, 1, 1], [], []>} : vector<16x128xf32>, vector<128x64xf32>, vector<16x64xf32> -> vector<16x64xf32>
    %92 = arith.addf %91, %4 : vector<16x64xf32>
    %93 = math.tanh %92 : vector<16x64xf32>
    %cst_28 = arith.constant dense<0.000000e+00> : vector<16x256xf32>
    %94 = tpu.matmul %93, %1, %cst_28 {dimension_numbers = #tpu.dot_dimension_numbers<[1], [0], [0], [1], [0, 0, 1, 1], [], []>} : vector<16x64xf32>, vector<64x256xf32>, vector<16x256xf32> -> vector<16x256xf32>
    %95 = arith.addf %94, %7 : vector<16x256xf32>
    %96 = vector.extract_strided_slice %95 {offsets = [0, 0], sizes = [16, 128], strides = [1, 1]} : vector<16x256xf32> to vector<16x128xf32>
    %97 = vector.extract_strided_slice %95 {offsets = [0, 128], sizes = [16, 128], strides = [1, 1]} : vector<16x256xf32> to vector<16x128xf32>
    %c8_i32_29 = arith.constant 8 : i32
    %98 = tpu.dynamic_rotate %97 by %c8_i32_29 dim 0 : vector<16x128xf32>, i32 -> vector<16x128xf32>
    %99 = arith.addf %96, %98 : vector<16x128xf32>
    %100 = arith.select %10, %99, %97 : vector<16x128xi1>, vector<16x128xf32>
    %101 = vector.broadcast %27 : f32 to vector<16x128xf32>
    %102 = arith.mulf %101, %100 : vector<16x128xf32>
    %103 = arith.addf %86, %102 : vector<16x128xf32>
    %104 = vector.extract_strided_slice %103 {offsets = [0, 0], sizes = [8, 128], strides = [1, 1]} : vector<16x128xf32> to vector<8x128xf32>
    %c3 = arith.constant 3 : index
    %c0_30 = arith.constant 0 : index
    %c0_31 = arith.constant 0 : index
    %105 = vector.load %arg8[%c3, %c0_30, %c0_31] : memref<8x8x128xf32, #tpu.memory_space<vmem>>, vector<1x8x128xf32>
    %106 = vector.shape_cast %105 : vector<1x8x128xf32> to vector<8x128xf32>
    %107 = vector.shape_cast %104 : vector<8x128xf32> to vector<1x8x128xf32>
    tpu.vector_store %arg8[%c3, %c0_30, %c0_31], %107 {strides = array<i32>} : memref<8x8x128xf32, #tpu.memory_space<vmem>>, vector<1x8x128xf32>,
    %cst_32 = arith.constant dense<0.000000e+00> : vector<16x64xf32>
    %108 = tpu.matmul %103, %0, %cst_32 {dimension_numbers = #tpu.dot_dimension_numbers<[1], [0], [0], [1], [0, 0, 1, 1], [], []>} : vector<16x128xf32>, vector<128x64xf32>, vector<16x64xf32> -> vector<16x64xf32>
    %109 = arith.addf %108, %4 : vector<16x64xf32>
    %110 = math.tanh %109 : vector<16x64xf32>
    %cst_33 = arith.constant dense<0.000000e+00> : vector<16x256xf32>
    %111 = tpu.matmul %110, %1, %cst_33 {dimension_numbers = #tpu.dot_dimension_numbers<[1], [0], [0], [1], [0, 0, 1, 1], [], []>} : vector<16x64xf32>, vector<64x256xf32>, vector<16x256xf32> -> vector<16x256xf32>
    %112 = arith.addf %111, %7 : vector<16x256xf32>
    %113 = vector.extract_strided_slice %112 {offsets = [0, 0], sizes = [16, 128], strides = [1, 1]} : vector<16x256xf32> to vector<16x128xf32>
    %114 = vector.extract_strided_slice %112 {offsets = [0, 128], sizes = [16, 128], strides = [1, 1]} : vector<16x256xf32> to vector<16x128xf32>
    %c8_i32_34 = arith.constant 8 : i32
    %115 = tpu.dynamic_rotate %114 by %c8_i32_34 dim 0 : vector<16x128xf32>, i32 -> vector<16x128xf32>
    %116 = arith.addf %113, %115 : vector<16x128xf32>
    %117 = arith.select %10, %116, %114 : vector<16x128xi1>, vector<16x128xf32>
    %118 = vector.broadcast %30 : f32 to vector<16x128xf32>
    %119 = arith.mulf %118, %117 : vector<16x128xf32>
    %120 = arith.addf %103, %119 : vector<16x128xf32>
    %121 = vector.extract_strided_slice %120 {offsets = [0, 0], sizes = [8, 128], strides = [1, 1]} : vector<16x128xf32> to vector<8x128xf32>
    %c4 = arith.constant 4 : index
    %c0_35 = arith.constant 0 : index
    %c0_36 = arith.constant 0 : index
    %122 = vector.load %arg8[%c4, %c0_35, %c0_36] : memref<8x8x128xf32, #tpu.memory_space<vmem>>, vector<1x8x128xf32>
    %123 = vector.shape_cast %122 : vector<1x8x128xf32> to vector<8x128xf32>
    %124 = vector.shape_cast %121 : vector<8x128xf32> to vector<1x8x128xf32>
    tpu.vector_store %arg8[%c4, %c0_35, %c0_36], %124 {strides = array<i32>} : memref<8x8x128xf32, #tpu.memory_space<vmem>>, vector<1x8x128xf32>,
    %cst_37 = arith.constant dense<0.000000e+00> : vector<16x64xf32>
    %125 = tpu.matmul %120, %0, %cst_37 {dimension_numbers = #tpu.dot_dimension_numbers<[1], [0], [0], [1], [0, 0, 1, 1], [], []>} : vector<16x128xf32>, vector<128x64xf32>, vector<16x64xf32> -> vector<16x64xf32>
    %126 = arith.addf %125, %4 : vector<16x64xf32>
    %127 = math.tanh %126 : vector<16x64xf32>
    %cst_38 = arith.constant dense<0.000000e+00> : vector<16x256xf32>
    %128 = tpu.matmul %127, %1, %cst_38 {dimension_numbers = #tpu.dot_dimension_numbers<[1], [0], [0], [1], [0, 0, 1, 1], [], []>} : vector<16x64xf32>, vector<64x256xf32>, vector<16x256xf32> -> vector<16x256xf32>
    %129 = arith.addf %128, %7 : vector<16x256xf32>
    %130 = vector.extract_strided_slice %129 {offsets = [0, 0], sizes = [16, 128], strides = [1, 1]} : vector<16x256xf32> to vector<16x128xf32>
    %131 = vector.extract_strided_slice %129 {offsets = [0, 128], sizes = [16, 128], strides = [1, 1]} : vector<16x256xf32> to vector<16x128xf32>
    %c8_i32_39 = arith.constant 8 : i32
    %132 = tpu.dynamic_rotate %131 by %c8_i32_39 dim 0 : vector<16x128xf32>, i32 -> vector<16x128xf32>
    %133 = arith.addf %130, %132 : vector<16x128xf32>
    %134 = arith.select %10, %133, %131 : vector<16x128xi1>, vector<16x128xf32>
    %135 = vector.broadcast %33 : f32 to vector<16x128xf32>
    %136 = arith.mulf %135, %134 : vector<16x128xf32>
    %137 = arith.addf %120, %136 : vector<16x128xf32>
    %138 = vector.extract_strided_slice %137 {offsets = [0, 0], sizes = [8, 128], strides = [1, 1]} : vector<16x128xf32> to vector<8x128xf32>
    %c5 = arith.constant 5 : index
    %c0_40 = arith.constant 0 : index
    %c0_41 = arith.constant 0 : index
    %139 = vector.load %arg8[%c5, %c0_40, %c0_41] : memref<8x8x128xf32, #tpu.memory_space<vmem>>, vector<1x8x128xf32>
    %140 = vector.shape_cast %139 : vector<1x8x128xf32> to vector<8x128xf32>
    %141 = vector.shape_cast %138 : vector<8x128xf32> to vector<1x8x128xf32>
    tpu.vector_store %arg8[%c5, %c0_40, %c0_41], %141 {strides = array<i32>} : memref<8x8x128xf32, #tpu.memory_space<vmem>>, vector<1x8x128xf32>,
    %cst_42 = arith.constant dense<0.000000e+00> : vector<16x64xf32>
    %142 = tpu.matmul %137, %0, %cst_42 {dimension_numbers = #tpu.dot_dimension_numbers<[1], [0], [0], [1], [0, 0, 1, 1], [], []>} : vector<16x128xf32>, vector<128x64xf32>, vector<16x64xf32> -> vector<16x64xf32>
    %143 = arith.addf %142, %4 : vector<16x64xf32>
    %144 = math.tanh %143 : vector<16x64xf32>
    %cst_43 = arith.constant dense<0.000000e+00> : vector<16x256xf32>
    %145 = tpu.matmul %144, %1, %cst_43 {dimension_numbers = #tpu.dot_dimension_numbers<[1], [0], [0], [1], [0, 0, 1, 1], [], []>} : vector<16x64xf32>, vector<64x256xf32>, vector<16x256xf32> -> vector<16x256xf32>
    %146 = arith.addf %145, %7 : vector<16x256xf32>
    %147 = vector.extract_strided_slice %146 {offsets = [0, 0], sizes = [16, 128], strides = [1, 1]} : vector<16x256xf32> to vector<16x128xf32>
    %148 = vector.extract_strided_slice %146 {offsets = [0, 128], sizes = [16, 128], strides = [1, 1]} : vector<16x256xf32> to vector<16x128xf32>
    %c8_i32_44 = arith.constant 8 : i32
    %149 = tpu.dynamic_rotate %148 by %c8_i32_44 dim 0 : vector<16x128xf32>, i32 -> vector<16x128xf32>
    %150 = arith.addf %147, %149 : vector<16x128xf32>
    %151 = arith.select %10, %150, %148 : vector<16x128xi1>, vector<16x128xf32>
    %152 = vector.broadcast %36 : f32 to vector<16x128xf32>
    %153 = arith.mulf %152, %151 : vector<16x128xf32>
    %154 = arith.addf %137, %153 : vector<16x128xf32>
    %155 = vector.extract_strided_slice %154 {offsets = [0, 0], sizes = [8, 128], strides = [1, 1]} : vector<16x128xf32> to vector<8x128xf32>
    %c6 = arith.constant 6 : index
    %c0_45 = arith.constant 0 : index
    %c0_46 = arith.constant 0 : index
    %156 = vector.load %arg8[%c6, %c0_45, %c0_46] : memref<8x8x128xf32, #tpu.memory_space<vmem>>, vector<1x8x128xf32>
    %157 = vector.shape_cast %156 : vector<1x8x128xf32> to vector<8x128xf32>
    %158 = vector.shape_cast %155 : vector<8x128xf32> to vector<1x8x128xf32>
    tpu.vector_store %arg8[%c6, %c0_45, %c0_46], %158 {strides = array<i32>} : memref<8x8x128xf32, #tpu.memory_space<vmem>>, vector<1x8x128xf32>,
    %cst_47 = arith.constant dense<0.000000e+00> : vector<16x64xf32>
    %159 = tpu.matmul %154, %0, %cst_47 {dimension_numbers = #tpu.dot_dimension_numbers<[1], [0], [0], [1], [0, 0, 1, 1], [], []>} : vector<16x128xf32>, vector<128x64xf32>, vector<16x64xf32> -> vector<16x64xf32>
    %160 = arith.addf %159, %4 : vector<16x64xf32>
    %161 = math.tanh %160 : vector<16x64xf32>
    %cst_48 = arith.constant dense<0.000000e+00> : vector<16x256xf32>
    %162 = tpu.matmul %161, %1, %cst_48 {dimension_numbers = #tpu.dot_dimension_numbers<[1], [0], [0], [1], [0, 0, 1, 1], [], []>} : vector<16x64xf32>, vector<64x256xf32>, vector<16x256xf32> -> vector<16x256xf32>
    %163 = arith.addf %162, %7 : vector<16x256xf32>
    %164 = vector.extract_strided_slice %163 {offsets = [0, 0], sizes = [16, 128], strides = [1, 1]} : vector<16x256xf32> to vector<16x128xf32>
    %165 = vector.extract_strided_slice %163 {offsets = [0, 128], sizes = [16, 128], strides = [1, 1]} : vector<16x256xf32> to vector<16x128xf32>
    %c8_i32_49 = arith.constant 8 : i32
    %166 = tpu.dynamic_rotate %165 by %c8_i32_49 dim 0 : vector<16x128xf32>, i32 -> vector<16x128xf32>
    %167 = arith.addf %164, %166 : vector<16x128xf32>
    %168 = arith.select %10, %167, %165 : vector<16x128xi1>, vector<16x128xf32>
    %169 = vector.broadcast %39 : f32 to vector<16x128xf32>
    %170 = arith.mulf %169, %168 : vector<16x128xf32>
    %171 = arith.addf %154, %170 : vector<16x128xf32>
    %172 = vector.extract_strided_slice %171 {offsets = [0, 0], sizes = [8, 128], strides = [1, 1]} : vector<16x128xf32> to vector<8x128xf32>
    %c7 = arith.constant 7 : index
    %c0_50 = arith.constant 0 : index
    %c0_51 = arith.constant 0 : index
    %173 = vector.load %arg8[%c7, %c0_50, %c0_51] : memref<8x8x128xf32, #tpu.memory_space<vmem>>, vector<1x8x128xf32>
    %174 = vector.shape_cast %173 : vector<1x8x128xf32> to vector<8x128xf32>
    %175 = vector.shape_cast %172 : vector<8x128xf32> to vector<1x8x128xf32>
    tpu.vector_store %arg8[%c7, %c0_50, %c0_51], %175 {strides = array<i32>} : memref<8x8x128xf32, #tpu.memory_space<vmem>>, vector<1x8x128xf32>,
    %c0_52 = arith.constant 0 : index
    %c0_53 = arith.constant 0 : index
    %176 = vector.load %arg9[%c0_52, %c0_53] : memref<16x128xf32, #tpu.memory_space<vmem>>, vector<16x128xf32>
    tpu.vector_store %arg9[%c0_52, %c0_53], %171 {strides = array<i32>} : memref<16x128xf32, #tpu.memory_space<vmem>>, vector<16x128xf32>,
    return
  }
  func.func @transform_0(%arg0: i32, %arg1: i32, %arg2: memref<8xf32, #tpu.memory_space<smem>>) -> (i32, i32) {
    %c0_i32 = arith.constant 0 : i32
    %c0_i32_0 = arith.constant 0 : i32
    return %arg0, %c0_i32 : i32, i32
  }
  func.func @transform_1(%arg0: i32, %arg1: i32, %arg2: memref<8xf32, #tpu.memory_space<smem>>) -> (i32, i32) {
    %c0_i32 = arith.constant 0 : i32
    %c0_i32_0 = arith.constant 0 : i32
    %c0_i32_1 = arith.constant 0 : i32
    return %c0_i32, %c0_i32_0 : i32, i32
  }
  func.func @transform_2(%arg0: i32, %arg1: i32, %arg2: memref<8xf32, #tpu.memory_space<smem>>) -> (i32, i32) {
    %c0_i32 = arith.constant 0 : i32
    %c0_i32_0 = arith.constant 0 : i32
    %c0_i32_1 = arith.constant 0 : i32
    return %c0_i32, %c0_i32_0 : i32, i32
  }
  func.func @transform_3(%arg0: i32, %arg1: i32, %arg2: memref<8xf32, #tpu.memory_space<smem>>) -> (i32, i32) {
    %c0_i32 = arith.constant 0 : i32
    %c0_i32_0 = arith.constant 0 : i32
    %c0_i32_1 = arith.constant 0 : i32
    return %c0_i32, %c0_i32_0 : i32, i32
  }
  func.func @transform_4(%arg0: i32, %arg1: i32, %arg2: memref<8xf32, #tpu.memory_space<smem>>) -> (i32, i32) {
    %c0_i32 = arith.constant 0 : i32
    %c0_i32_0 = arith.constant 0 : i32
    %c0_i32_1 = arith.constant 0 : i32
    return %c0_i32, %c0_i32_0 : i32, i32
  }
  func.func @transform_5(%arg0: i32, %arg1: i32, %arg2: memref<8xf32, #tpu.memory_space<smem>>) -> (i32, i32, i32) {
    %c0_i32 = arith.constant 0 : i32
    %c0_i32_0 = arith.constant 0 : i32
    return %arg1, %arg0, %c0_i32 : i32, i32, i32
  }
}

</mosaic_0001>

<bundles_post_ra>
// kernel: cs_neural_ode_forward.1
= control target key start
LH: loop header
LB: loop body
LE: loop exit
PB: predicated region body
PF: predicated region fallthrough
CT: control target
= control target key end

     0   :  { %s2839_s0 = inlined_call_operand.vmem [shape: f32[8], index: 0, kind: input, shape index: {}]   ;;  %s2840_s1 = inlined_call_operand.vmem [shape: f32[8,128], index: 1, kind: input, shape index: {}]   ;;  %s2841_s2 = inlined_call_operand.vmem [shape: f32[128,64], index: 2, kind: input, shape index: {}]   ;;  %s2842_s3 = inlined_call_operand.vmem [shape: f32[1,64], index: 3, kind: input, shape index: {}]   ;;  %s2843_s4 = inlined_call_operand.vmem [shape: f32[64,256], index: 4, kind: input, shape index: {}]   ;;  %s2844_s5 = inlined_call_operand.vmem [shape: f32[1,256], index: 5, kind: input, shape index: {}]   ;;  %s2845_s6 = inlined_call_operand.vmem [shape: f32[8,8,128], index: 6, kind: output, shape index: {}]  }
   0x1   :  { %s11_s23 = sshll.u32 %s2839_s0, 4  ;;  %s12_s23 = int_to_ptr.vmem [resolvable:$true] %s11_s23 }
   0x2   :  { %s2356_s24 = scalar_lea.vmem %s12_s23, 16  ;;  %p2361_p1 = scmp.lt.s32.totalorder %s12_s23, %s12_s23 }
   0x3   :  { %p2357_p0 = scmp.ne.s32.totalorder %s12_s23, %s2356_s24  ;;  %p2362_p2 = scmp.lt.s32.totalorder %s2356_s24, %s2356_s24 }
   0x5   :  { %p2363_p3 = por %p2362_p2, %p2361_p1 }
   0x7   :  { %p2364_p4 = pnand %p2363_p3, %p2357_p0 }
   0x9   :  { %2367 = shalt.err (!%p2364_p4)  }
   0xa   :  { %s2370_s25 = smov [#allocation4]  }
   0xb   :  { %14 = dma.vmem_to_smem %s12_s23, 16, %s2370_s25, [#allocation3] }
   0xc   :  { %2368 = dma.done.wait [#allocation3], 16 }
   0xd   :  { %2369 = vsyncadd [#allocation3], 4294967280 }
   0xe   :  { %16 = sfence }
   0xf   :  { %v27_v0 = vld [vmem:[%s2841_s2] sm:$0xff]  ;;  %v28_v1 = vld [vmem:[%s2841_s2 + $0x8] sm:$0xff]  ;;  %v29_v2 = vld [vmem:[%s2841_s2 + $0x10] sm:$0xff]  ;;  %v2371_v44 = vmov 0.0   ;;  %vm186_vm0 = vcmask 523264   ;;  %v68_v57 = vlaneseq  ;;  %s1484_s17 = sld [smem:[#allocation4 + $0x1]] }
  0x10   :  { %v2419_v3 = vpack.c.bf16 %v28_v1, %v27_v0  ;;  %v30_v4 = vld [vmem:[%s2841_s2 + $0x18] sm:$0xff]  ;;  %v31_v6 = vld [vmem:[%s2841_s2 + $0x20] sm:$0xff]  ;;  %v32_v7 = vld [vmem:[%s2841_s2 + $0x28] sm:$0xff]  ;;  %257 = vmatprep.mubr.f32.mxu1 %v2371_v44  ;;  %s1485_s20 = sld [smem:[#allocation4 + $0x2]]  ;;  %s1487_s25 = sld [smem:[#allocation4 + $0x4]] }
  0x11   :  { %v2424_v5 = vpack.c.bf16 %v30_v4, %v29_v2  ;;  %v2435_v8 = vpack.c.bf16 %v32_v7, %v31_v6  ;;  %v2440_v9 = vld [vmem:[%s2840_s1] sm:$0xff]  ;;  %v44_v10 = vld [vmem:[%s2843_s4 + $0x8] sm:$0xff]  ;;  %v33_v11 = vld [vmem:[%s2841_s2 + $0x30] sm:$0xff]  ;;  %v69_v58 = vshrl.u32 %v68_v57, 7  ;;  %s1486_s1 = sld [smem:[#allocation4 + $0x3]]  ;;  %s1488_s28 = sld [smem:[#allocation4 + $0x5]] }
  0x12   :  { %1939 = vmatprep.subr.bf16.mxu0 %v2419_v3  ;;  %v34_v12 = vld [vmem:[%s2841_s2 + $0x38] sm:$0xff]  ;;  %1690 = vmatprep.mubr.f32.mxu0 %v2440_v9  ;;  %v35_v16 = vld [vmem:[%s2841_s2 + $0x40] sm:$0xff]  ;;  %v36_v17 = vld [vmem:[%s2841_s2 + $0x48] sm:$0xff]  ;;  %s1489_s30 = sld [smem:[#allocation4 + $0x6]]  ;;  %s1490_s9 = sld [smem:[#allocation4 + $0x7]] }
  0x13   :  { %1941 = vmatpush3.bf16.msra.mxu0 %v2419_v3  ;;  %v46_v13 = vld [vmem:[%s2843_s4 + $0x18] sm:$0xff]  ;;  %v2459_v15 = vpack.c.bf16 %v34_v12, %v33_v11  ;;  %v2470_v18 = vpack.c.bf16 %v36_v17, %v35_v16  ;;  %v37_v19 = vld [vmem:[%s2841_s2 + $0x50] sm:$0xff]  ;;  %v39_v22 = vld [vmem:[%s2841_s2 + $0x60] sm:$0xff]  ;;  %v70_v59 = vsub.s32 0, %v69_v58  ;;  %v74_v60 = vsub.s32 1, %v69_v58 }
  0x14   :  { %1943 = vmatprep.subr.bf16.mxu0 %v2424_v5  ;;  %v2455_v14 = vpack.c.bf16 %v46_v13, %v44_v10  ;;  %v38_v20 = vld [vmem:[%s2841_s2 + $0x58] sm:$0xff]  ;;  %v40_v23 = vld [vmem:[%s2841_s2 + $0x68] sm:$0xff]  ;;  %v41_v25 = vld [vmem:[%s2841_s2 + $0x70] sm:$0xff] }
  0x15   :  { %v2480_v21 = vpack.c.bf16 %v38_v20, %v37_v19  ;;  %v2490_v24 = vpack.c.bf16 %v40_v23, %v39_v22  ;;  %v42_v26 = vld [vmem:[%s2841_s2 + $0x78] sm:$0xff]  ;;  %v43_v28 = vld [vmem:[%s2843_s4] sm:$0xff]  ;;  %v45_v29 = vld [vmem:[%s2843_s4 + $0x10] sm:$0xff] }
  0x16   :  { %1971 = vmatprep.subr.bf16.mxu1 %v2455_v14  ;;  %v2500_v27 = vpack.c.bf16 %v42_v26, %v41_v25  ;;  %v2513_v30 = vpack.c.bf16 %v45_v29, %v43_v28  ;;  %v48_v31 = vld [vmem:[%s2843_s4 + $0x28] sm:$0xff]  ;;  %v50_v32 = vld [vmem:[%s2843_s4 + $0x38] sm:$0xff]  ;;  %v47_v34 = vld [vmem:[%s2843_s4 + $0x20] sm:$0xff] }
  0x17   :  { %1945 = vmatpush3.bf16.msra.mxu0 %v2424_v5  ;;  %v2523_v33 = vpack.c.bf16 %v50_v32, %v48_v31  ;;  %v49_v35 = vld [vmem:[%s2843_s4 + $0x30] sm:$0xff]  ;;  %v52_v37 = vld [vmem:[%s2843_s4 + $0x48] sm:$0xff]  ;;  %v54_v38 = vld [vmem:[%s2843_s4 + $0x58] sm:$0xff] }
  0x18   :  { %1947 = vmatprep.subr.bf16.mxu0 %v2435_v8  ;;  %1973 = vmatpush1.bf16.msra.mxu1 %v2513_v30  ;;  %v2531_v36 = vpack.c.bf16 %v49_v35, %v47_v34  ;;  %v51_v39 = vld [vmem:[%s2843_s4 + $0x40] sm:$0xff]  ;;  %v2546_v40 = vpack.c.bf16 %v54_v38, %v52_v37  ;;  %v53_v41 = vld [vmem:[%s2843_s4 + $0x50] sm:$0xff]  ;;  %v56_v42 = vld [vmem:[%s2843_s4 + $0x68] sm:$0xff]  ;;  %v444_v35 = vstv %s1484_s17 }
  0x19   :  { %1975 = vmatprep.subr.bf16.mxu1 %v2523_v33  ;;  %v58_v43 = vld [vmem:[%s2843_s4 + $0x78] sm:$0xff]  ;;  %v2559_v45 = vpack.c.bf16 %v53_v41, %v51_v39  ;;  %v55_v47 = vld [vmem:[%s2843_s4 + $0x60] sm:$0xff]  ;;  %v57_v48 = vld [vmem:[%s2843_s4 + $0x70] sm:$0xff] }
  0x1a   :  { %v2561_v46 = vpack.c.bf16 %v58_v43, %v56_v42  ;;  %v2572_v49 = vpack.c.bf16 %v57_v48, %v55_v47  ;;  %v2584_v50 = vld [vmem:[%s2842_s3] ss:$0 sm:$0xff]  ;;  %s94_s3 = sld [smem:[#allocation4]] }
  0x1b   :  { %1949 = vmatpush3.bf16.msra.mxu0 %v2435_v8  ;;  %v66_v61 = vld [vmem:[%s2844_s5] sm:$0x3] }
  0x1c   :  { %1951 = vmatprep.subr.bf16.mxu0 %v2459_v15  ;;  %1977 = vmatpush1.bf16.msra.mxu1 %v2531_v36  ;;  %v2610_v0 = vrot.slane %v66_v61, %v70_v59  ;;  %v2612_v1 = vrot.slane %v66_v61, %v74_v60  ;;  %v615_v60 = vstv %s1485_s20 }
  0x1d   :  { %1979 = vmatprep.subr.bf16.mxu1 %v2546_v40 }
  0x1f   :  { %1953 = vmatpush3.bf16.msra.mxu0 %v2459_v15 }
  0x20   :  { %1955 = vmatprep.subr.bf16.mxu0 %v2470_v18  ;;  %1981 = vmatpush1.bf16.msra.mxu1 %v2559_v45  ;;  %v274_v10 = vstv %s94_s3 }
  0x21   :  { %1983 = vmatprep.subr.bf16.mxu1 %v2561_v46 }
  0x23   :  { %1957 = vmatpush3.bf16.msra.mxu0 %v2470_v18 }
  0x24   :  { %1959 = vmatprep.subr.bf16.mxu0 %v2480_v21  ;;  %1985 = vmatpush1.bf16.msra.mxu1 %v2572_v49 }
  0x25   :  { %1987 = vmatprep.subr.bf16.mxu1 %v2419_v3 }
  0x27   :  { %1961 = vmatpush3.bf16.msra.mxu0 %v2480_v21 }
  0x28   :  { %1963 = vmatprep.subr.bf16.mxu0 %v2490_v24 }
  0x2b   :  { %1965 = vmatpush3.bf16.msra.mxu0 %v2490_v24 }
  0x2c   :  { %1967 = vmatprep.subr.bf16.mxu0 %v2500_v27 }
  0x2f   :  { %1969 = vmatpush3.bf16.msra.mxu0 %v2500_v27 }
  0x30   :  { %2019 = vmatprep.subr.bf16.mxu0 %v2455_v14 }
  0x32   :  { %1691 = vmatmul.mubr.f32.vlgmr.msra.gmra.mrb[0].mxu0 %v2440_v9 }
  0x33   :  { %2021 = vmatpush1.bf16.msra.mxu0 %v2513_v30  ;;  %427 = vmatprep.mubr.f32.mxu0 %v2371_v44 }
  0x34   :  { %2023 = vmatprep.subr.bf16.mxu0 %v2523_v33 }
  0x37   :  { %2025 = vmatpush1.bf16.msra.mxu0 %v2531_v36 }
  0x38   :  { %2027 = vmatprep.subr.bf16.mxu0 %v2546_v40 }
  0x3b   :  { %2029 = vmatpush1.bf16.msra.mxu0 %v2559_v45 }
  0x3c   :  { %2031 = vmatprep.subr.bf16.mxu0 %v2561_v46 }
  0x3f   :  { %2033 = vmatpush1.bf16.msra.mxu0 %v2572_v49 }
  0x40   :  { %2035 = vmatprep.subr.bf16.mxu0 %v2419_v3 }
 0x105   :  { %v1692_v51 = vpop.f32.mrb[0].mxu0 }
 0x106   :  { %v175_v52 = vpop.f32.mrb[1].mxu0  ;;  %v181_v54 = vadd.f32 %v1692_v51, %v2584_v50 }
 0x107   :  { %v176_v53 = vadd.f32 %v2584_v50, %v175_v52 }
 0x109   :  { %2324 = vtanh.f32 %v176_v53 }
 0x10a   :  { %2326 = vtanh.f32 %v181_v54 }
 0x113   :  { %v2325_v55 = vpop.eup %2324 }
 0x114   :  { %1491 = vmatmul.mubr.msk.f32.vlgmr.msra.gmra.mrb[0].mxu1 %vm186_vm0, %v2325_v55  ;;  %v2327_v56 = vpop.eup %2326 }
 0x115   :  { %263 = vmatprep.mubr.f32.mxu1 %v2371_v44  ;;  %1989 = vmatpush3.bf16.msra.mxu1 %v2419_v3 }
 0x116   :  { %1991 = vmatprep.subr.bf16.mxu1 %v2424_v5 }
 0x118   :  { %1492 = vmatmul.mubr.msk.f32.gmra.mrb[2].mxu1 %vm186_vm0, %v2327_v56 }
 0x119   :  { %1993 = vmatpush3.bf16.msra.mxu1 %v2424_v5 }
 0x11a   :  { %1995 = vmatprep.subr.bf16.mxu1 %v2435_v8 }
 0x11d   :  { %1997 = vmatpush3.bf16.msra.mxu1 %v2435_v8 }
 0x11e   :  { %1999 = vmatprep.subr.bf16.mxu1 %v2459_v15 }
 0x121   :  { %2001 = vmatpush3.bf16.msra.mxu1 %v2459_v15 }
 0x122   :  { %2003 = vmatprep.subr.bf16.mxu1 %v2470_v18 }
 0x125   :  { %2005 = vmatpush3.bf16.msra.mxu1 %v2470_v18 }
 0x126   :  { %2007 = vmatprep.subr.bf16.mxu1 %v2480_v21 }
 0x129   :  { %2009 = vmatpush3.bf16.msra.mxu1 %v2480_v21 }
 0x12a   :  { %2011 = vmatprep.subr.bf16.mxu1 %v2490_v24 }
 0x12d   :  { %2013 = vmatpush3.bf16.msra.mxu1 %v2490_v24 }
 0x12e   :  { %2015 = vmatprep.subr.bf16.mxu1 %v2500_v27 }
 0x131   :  { %2017 = vmatpush3.bf16.msra.mxu1 %v2500_v27 }
 0x132   :  { %2067 = vmatprep.subr.bf16.mxu1 %v2455_v14 }
 0x1e7   :  { %v259_v62 = vpop.f32.mrb[0].mxu1 }
 0x1e8   :  { %v261_v63 = vpop.f32.mrb[1].mxu1  ;;  %v260_v6 = vadd.f32 %v259_v62, %v2610_v0 }
 0x1eb   :  { %v265_v2 = vpop.f32.mrb[2].mxu1 }
 0x1ec   :  { %v267_v4 = vpop.f32.mrb[3].mxu1 }
 0x1ed   :  { %v268_v7 = vadd.f32 %v267_v4, %v2612_v1 }
 0x1ef   :  { %v270_v11 = vadd.f32 %v268_v7, %v260_v6  ;;  %v276_v12 = vmul.f32 %v274_v10, %v268_v7 }
 0x1f1   :  { %v275_v13 = vmul.f32 %v274_v10, %v270_v11  ;;  %v278_v17 = vadd.f32 %v276_v12, %v2440_v9 }
 0x1f3   :  { %v277_v16 = vadd.f32 %v275_v13, %v2440_v9 }
 0x1f5   :  { %279 = vst [vmem:[%s2845_s6] sm:$0xff] %v277_v16  ;;  %1725 = vmatprep.mubr.f32.mxu1 %v277_v16 }
 0x1f6   :  { %1726 = vmatmul.mubr.f32.vlgmr.msra.gmra.mrb[4].mxu1 %v278_v17 }
 0x1f7   :  { %2069 = vmatpush1.bf16.msra.mxu1 %v2513_v30  ;;  %598 = vmatprep.mubr.f32.mxu1 %v2371_v44 }
 0x1f8   :  { %2071 = vmatprep.subr.bf16.mxu1 %v2523_v33 }
 0x1fb   :  { %2073 = vmatpush1.bf16.msra.mxu1 %v2531_v36 }
 0x1fc   :  { %2075 = vmatprep.subr.bf16.mxu1 %v2546_v40 }
 0x1ff   :  { %2077 = vmatpush1.bf16.msra.mxu1 %v2559_v45 }
 0x200   :  { %2079 = vmatprep.subr.bf16.mxu1 %v2561_v46 }
 0x203   :  { %2081 = vmatpush1.bf16.msra.mxu1 %v2572_v49 }
 0x204   :  { %2083 = vmatprep.subr.bf16.mxu1 %v2419_v3 }
 0x2c9   :  { %v1727_v9 = vpop.f32.mrb[4].mxu1 }
 0x2ca   :  { %v346_v19 = vpop.f32.mrb[5].mxu1  ;;  %v352_v22 = vadd.f32 %v1727_v9, %v2584_v50 }
 0x2cb   :  { %v347_v20 = vadd.f32 %v2584_v50, %v346_v19 }
 0x2cd   :  { %2328 = vtanh.f32 %v347_v20 }
 0x2ce   :  { %2330 = vtanh.f32 %v352_v22 }
 0x2d7   :  { %v2329_v23 = vpop.eup %2328 }
 0x2d8   :  { %1493 = vmatmul.mubr.msk.f32.vlgmr.msra.gmra.mrb[2].mxu0 %vm186_vm0, %v2329_v23  ;;  %v2331_v25 = vpop.eup %2330  ;;  %v786_v23 = vstv %s1486_s1 }
 0x2d9   :  { %433 = vmatprep.mubr.f32.mxu0 %v2371_v44  ;;  %2037 = vmatpush3.bf16.msra.mxu0 %v2419_v3 }
 0x2da   :  { %2039 = vmatprep.subr.bf16.mxu0 %v2424_v5 }
 0x2dc   :  { %1494 = vmatmul.mubr.msk.f32.gmra.mrb[4].mxu0 %vm186_vm0, %v2331_v25 }
 0x2dd   :  { %2041 = vmatpush3.bf16.msra.mxu0 %v2424_v5 }
 0x2de   :  { %2043 = vmatprep.subr.bf16.mxu0 %v2435_v8 }
 0x2e1   :  { %2045 = vmatpush3.bf16.msra.mxu0 %v2435_v8 }
 0x2e2   :  { %2047 = vmatprep.subr.bf16.mxu0 %v2459_v15 }
 0x2e5   :  { %2049 = vmatpush3.bf16.msra.mxu0 %v2459_v15 }
 0x2e6   :  { %2051 = vmatprep.subr.bf16.mxu0 %v2470_v18 }
 0x2e9   :  { %2053 = vmatpush3.bf16.msra.mxu0 %v2470_v18 }
 0x2ea   :  { %2055 = vmatprep.subr.bf16.mxu0 %v2480_v21 }
 0x2ed   :  { %2057 = vmatpush3.bf16.msra.mxu0 %v2480_v21 }
 0x2ee   :  { %2059 = vmatprep.subr.bf16.mxu0 %v2490_v24 }
 0x2f1   :  { %2061 = vmatpush3.bf16.msra.mxu0 %v2490_v24 }
 0x2f2   :  { %2063 = vmatprep.subr.bf16.mxu0 %v2500_v27 }
 0x2f5   :  { %2065 = vmatpush3.bf16.msra.mxu0 %v2500_v27 }
 0x2f6   :  { %2115 = vmatprep.subr.bf16.mxu0 %v2455_v14 }
 0x3ab   :  { %v429_v26 = vpop.f32.mrb[2].mxu0 }
 0x3ac   :  { %v431_v28 = vpop.f32.mrb[3].mxu0  ;;  %v430_v32 = vadd.f32 %v429_v26, %v2610_v0 }
 0x3af   :  { %v435_v29 = vpop.f32.mrb[4].mxu0 }
 0x3b0   :  { %v437_v31 = vpop.f32.mrb[5].mxu0 }
 0x3b1   :  { %v438_v34 = vadd.f32 %v437_v31, %v2612_v1 }
 0x3b3   :  { %v440_v37 = vadd.f32 %v438_v34, %v430_v32  ;;  %v446_v38 = vmul.f32 %v444_v35, %v438_v34 }
 0x3b5   :  { %v445_v39 = vmul.f32 %v444_v35, %v440_v37  ;;  %v448_v42 = vadd.f32 %v446_v38, %v278_v17 }
 0x3b7   :  { %v447_v41 = vadd.f32 %v445_v39, %v277_v16 }
 0x3b9   :  { %1495 = vst [vmem:[%s2845_s6 + $0x8] sm:$0xff] %v447_v41  ;;  %1760 = vmatprep.mubr.f32.mxu0 %v447_v41 }
 0x3ba   :  { %1761 = vmatmul.mubr.f32.vlgmr.msra.gmra.mrb[6].mxu0 %v448_v42 }
 0x3bb   :  { %2117 = vmatpush1.bf16.msra.mxu0 %v2513_v30  ;;  %769 = vmatprep.mubr.f32.mxu0 %v2371_v44 }
 0x3bc   :  { %2119 = vmatprep.subr.bf16.mxu0 %v2523_v33 }
 0x3bf   :  { %2121 = vmatpush1.bf16.msra.mxu0 %v2531_v36 }
 0x3c0   :  { %2123 = vmatprep.subr.bf16.mxu0 %v2546_v40 }
 0x3c3   :  { %2125 = vmatpush1.bf16.msra.mxu0 %v2559_v45 }
 0x3c4   :  { %2127 = vmatprep.subr.bf16.mxu0 %v2561_v46 }
 0x3c7   :  { %2129 = vmatpush1.bf16.msra.mxu0 %v2572_v49 }
 0x3c8   :  { %2131 = vmatprep.subr.bf16.mxu0 %v2419_v3 }
 0x48d   :  { %v1762_v43 = vpop.f32.mrb[6].mxu0 }
 0x48e   :  { %v517_v47 = vpop.f32.mrb[7].mxu0  ;;  %v523_v51 = vadd.f32 %v1762_v43, %v2584_v50 }
 0x48f   :  { %v518_v48 = vadd.f32 %v2584_v50, %v517_v47 }
 0x491   :  { %2332 = vtanh.f32 %v518_v48 }
 0x492   :  { %2334 = vtanh.f32 %v523_v51 }
 0x49b   :  { %v2333_v52 = vpop.eup %2332 }
 0x49c   :  { %1496 = vmatmul.mubr.msk.f32.vlgmr.msra.gmra.mrb[6].mxu1 %vm186_vm0, %v2333_v52  ;;  %v2335_v53 = vpop.eup %2334  ;;  %v957_v52 = vstv %s1487_s25 }
 0x49d   :  { %604 = vmatprep.mubr.f32.mxu1 %v2371_v44  ;;  %2085 = vmatpush3.bf16.msra.mxu1 %v2419_v3 }
 0x49e   :  { %2087 = vmatprep.subr.bf16.mxu1 %v2424_v5 }
 0x4a0   :  { %1497 = vmatmul.mubr.msk.f32.gmra.mrb[8].mxu1 %vm186_vm0, %v2335_v53 }
 0x4a1   :  { %2089 = vmatpush3.bf16.msra.mxu1 %v2424_v5 }
 0x4a2   :  { %2091 = vmatprep.subr.bf16.mxu1 %v2435_v8 }
 0x4a5   :  { %2093 = vmatpush3.bf16.msra.mxu1 %v2435_v8 }
 0x4a6   :  { %2095 = vmatprep.subr.bf16.mxu1 %v2459_v15 }
 0x4a9   :  { %2097 = vmatpush3.bf16.msra.mxu1 %v2459_v15 }
 0x4aa   :  { %2099 = vmatprep.subr.bf16.mxu1 %v2470_v18 }
 0x4ad   :  { %2101 = vmatpush3.bf16.msra.mxu1 %v2470_v18 }
 0x4ae   :  { %2103 = vmatprep.subr.bf16.mxu1 %v2480_v21 }
 0x4b1   :  { %2105 = vmatpush3.bf16.msra.mxu1 %v2480_v21 }
 0x4b2   :  { %2107 = vmatprep.subr.bf16.mxu1 %v2490_v24 }
 0x4b5   :  { %2109 = vmatpush3.bf16.msra.mxu1 %v2490_v24 }
 0x4b6   :  { %2111 = vmatprep.subr.bf16.mxu1 %v2500_v27 }
 0x4b9   :  { %2113 = vmatpush3.bf16.msra.mxu1 %v2500_v27 }
 0x4ba   :  { %2163 = vmatprep.subr.bf16.mxu1 %v2455_v14 }
 0x56f   :  { %v600_v54 = vpop.f32.mrb[6].mxu1 }
 0x570   :  { %v602_v55 = vpop.f32.mrb[7].mxu1  ;;  %v601_v58 = vadd.f32 %v600_v54, %v2610_v0 }
 0x573   :  { %v606_v56 = vpop.f32.mrb[8].mxu1 }
 0x574   :  { %v608_v57 = vpop.f32.mrb[9].mxu1 }
 0x575   :  { %v609_v59 = vadd.f32 %v608_v57, %v2612_v1 }
 0x577   :  { %v611_v61 = vadd.f32 %v609_v59, %v601_v58  ;;  %v617_v62 = vmul.f32 %v615_v60, %v609_v59 }
 0x579   :  { %v616_v63 = vmul.f32 %v615_v60, %v611_v61  ;;  %v619_v4 = vadd.f32 %v617_v62, %v448_v42 }
 0x57b   :  { %v618_v2 = vadd.f32 %v616_v63, %v447_v41 }
 0x57d   :  { %1498 = vst [vmem:[%s2845_s6 + $0x10] sm:$0xff] %v618_v2  ;;  %1795 = vmatprep.mubr.f32.mxu1 %v618_v2 }
 0x57e   :  { %1796 = vmatmul.mubr.f32.vlgmr.msra.gmra.mrb[10].mxu1 %v619_v4 }
 0x57f   :  { %2165 = vmatpush1.bf16.msra.mxu1 %v2513_v30  ;;  %940 = vmatprep.mubr.f32.mxu1 %v2371_v44 }
 0x580   :  { %2167 = vmatprep.subr.bf16.mxu1 %v2523_v33 }
 0x583   :  { %2169 = vmatpush1.bf16.msra.mxu1 %v2531_v36 }
 0x584   :  { %2171 = vmatprep.subr.bf16.mxu1 %v2546_v40 }
 0x587   :  { %2173 = vmatpush1.bf16.msra.mxu1 %v2559_v45 }
 0x588   :  { %2175 = vmatprep.subr.bf16.mxu1 %v2561_v46 }
 0x58b   :  { %2177 = vmatpush1.bf16.msra.mxu1 %v2572_v49 }
 0x58c   :  { %2179 = vmatprep.subr.bf16.mxu1 %v2419_v3 }
 0x651   :  { %v1797_v6 = vpop.f32.mrb[10].mxu1 }
 0x652   :  { %v688_v7 = vpop.f32.mrb[11].mxu1  ;;  %v694_v11 = vadd.f32 %v1797_v6, %v2584_v50 }
 0x653   :  { %v689_v10 = vadd.f32 %v2584_v50, %v688_v7 }
 0x655   :  { %2336 = vtanh.f32 %v689_v10 }
 0x656   :  { %2338 = vtanh.f32 %v694_v11 }
 0x65f   :  { %v2337_v12 = vpop.eup %2336 }
 0x660   :  { %1499 = vmatmul.mubr.msk.f32.vlgmr.msra.gmra.mrb[8].mxu0 %vm186_vm0, %v2337_v12  ;;  %v2339_v13 = vpop.eup %2338  ;;  %v1128_v12 = vstv %s1488_s28 }
 0x661   :  { %775 = vmatprep.mubr.f32.mxu0 %v2371_v44  ;;  %2133 = vmatpush3.bf16.msra.mxu0 %v2419_v3 }
 0x662   :  { %2135 = vmatprep.subr.bf16.mxu0 %v2424_v5 }
 0x664   :  { %1500 = vmatmul.mubr.msk.f32.gmra.mrb[10].mxu0 %vm186_vm0, %v2339_v13 }
 0x665   :  { %2137 = vmatpush3.bf16.msra.mxu0 %v2424_v5 }
 0x666   :  { %2139 = vmatprep.subr.bf16.mxu0 %v2435_v8 }
 0x669   :  { %2141 = vmatpush3.bf16.msra.mxu0 %v2435_v8 }
 0x66a   :  { %2143 = vmatprep.subr.bf16.mxu0 %v2459_v15 }
 0x66d   :  { %2145 = vmatpush3.bf16.msra.mxu0 %v2459_v15 }
 0x66e   :  { %2147 = vmatprep.subr.bf16.mxu0 %v2470_v18 }
 0x671   :  { %2149 = vmatpush3.bf16.msra.mxu0 %v2470_v18 }
 0x672   :  { %2151 = vmatprep.subr.bf16.mxu0 %v2480_v21 }
 0x675   :  { %2153 = vmatpush3.bf16.msra.mxu0 %v2480_v21 }
 0x676   :  { %2155 = vmatprep.subr.bf16.mxu0 %v2490_v24 }
 0x679   :  { %2157 = vmatpush3.bf16.msra.mxu0 %v2490_v24 }
 0x67a   :  { %2159 = vmatprep.subr.bf16.mxu0 %v2500_v27 }
 0x67d   :  { %2161 = vmatpush3.bf16.msra.mxu0 %v2500_v27 }
 0x67e   :  { %2211 = vmatprep.subr.bf16.mxu0 %v2455_v14 }
 0x733   :  { %v771_v16 = vpop.f32.mrb[8].mxu0 }
 0x734   :  { %v773_v17 = vpop.f32.mrb[9].mxu0  ;;  %v772_v20 = vadd.f32 %v771_v16, %v2610_v0 }
 0x737   :  { %v777_v9 = vpop.f32.mrb[10].mxu0 }
 0x738   :  { %v779_v19 = vpop.f32.mrb[11].mxu0 }
 0x739   :  { %v780_v22 = vadd.f32 %v779_v19, %v2612_v1 }
 0x73b   :  { %v782_v25 = vadd.f32 %v780_v22, %v772_v20  ;;  %v788_v26 = vmul.f32 %v786_v23, %v780_v22 }
 0x73d   :  { %v787_v28 = vmul.f32 %v786_v23, %v782_v25  ;;  %v790_v31 = vadd.f32 %v788_v26, %v619_v4 }
 0x73f   :  { %v789_v29 = vadd.f32 %v787_v28, %v618_v2 }
 0x741   :  { %1501 = vst [vmem:[%s2845_s6 + $0x18] sm:$0xff] %v789_v29  ;;  %1830 = vmatprep.mubr.f32.mxu0 %v789_v29 }
 0x742   :  { %1831 = vmatmul.mubr.f32.vlgmr.msra.gmra.mrb[12].mxu0 %v790_v31 }
 0x743   :  { %2213 = vmatpush1.bf16.msra.mxu0 %v2513_v30  ;;  %1111 = vmatprep.mubr.f32.mxu0 %v2371_v44 }
 0x744   :  { %2215 = vmatprep.subr.bf16.mxu0 %v2523_v33 }
 0x747   :  { %2217 = vmatpush1.bf16.msra.mxu0 %v2531_v36 }
 0x748   :  { %2219 = vmatprep.subr.bf16.mxu0 %v2546_v40 }
 0x74b   :  { %2221 = vmatpush1.bf16.msra.mxu0 %v2559_v45 }
 0x74c   :  { %2223 = vmatprep.subr.bf16.mxu0 %v2561_v46 }
 0x74f   :  { %2225 = vmatpush1.bf16.msra.mxu0 %v2572_v49 }
 0x750   :  { %2227 = vmatprep.subr.bf16.mxu0 %v2419_v3 }
 0x815   :  { %v1832_v32 = vpop.f32.mrb[12].mxu0 }
 0x816   :  { %v859_v34 = vpop.f32.mrb[13].mxu0  ;;  %v865_v37 = vadd.f32 %v1832_v32, %v2584_v50 }
 0x817   :  { %v860_v35 = vadd.f32 %v2584_v50, %v859_v34 }
 0x819   :  { %2340 = vtanh.f32 %v860_v35 }
 0x81a   :  { %2342 = vtanh.f32 %v865_v37 }
 0x823   :  { %v2341_v38 = vpop.eup %2340 }
 0x824   :  { %1502 = vmatmul.mubr.msk.f32.vlgmr.msra.gmra.mrb[12].mxu1 %vm186_vm0, %v2341_v38  ;;  %v2343_v39 = vpop.eup %2342 }
 0x825   :  { %946 = vmatprep.mubr.f32.mxu1 %v2371_v44  ;;  %2181 = vmatpush3.bf16.msra.mxu1 %v2419_v3 }
 0x826   :  { %2183 = vmatprep.subr.bf16.mxu1 %v2424_v5 }
 0x828   :  { %1503 = vmatmul.mubr.msk.f32.gmra.mrb[14].mxu1 %vm186_vm0, %v2343_v39 }
 0x829   :  { %2185 = vmatpush3.bf16.msra.mxu1 %v2424_v5 }
 0x82a   :  { %2187 = vmatprep.subr.bf16.mxu1 %v2435_v8 }
 0x82d   :  { %2189 = vmatpush3.bf16.msra.mxu1 %v2435_v8 }
 0x82e   :  { %2191 = vmatprep.subr.bf16.mxu1 %v2459_v15 }
 0x831   :  { %2193 = vmatpush3.bf16.msra.mxu1 %v2459_v15 }
 0x832   :  { %2195 = vmatprep.subr.bf16.mxu1 %v2470_v18 }
 0x835   :  { %2197 = vmatpush3.bf16.msra.mxu1 %v2470_v18 }
 0x836   :  { %2199 = vmatprep.subr.bf16.mxu1 %v2480_v21 }
 0x839   :  { %2201 = vmatpush3.bf16.msra.mxu1 %v2480_v21 }
 0x83a   :  { %2203 = vmatprep.subr.bf16.mxu1 %v2490_v24 }
 0x83d   :  { %2205 = vmatpush3.bf16.msra.mxu1 %v2490_v24 }
 0x83e   :  { %2207 = vmatprep.subr.bf16.mxu1 %v2500_v27 }
 0x841   :  { %2209 = vmatpush3.bf16.msra.mxu1 %v2500_v27 }
 0x842   :  { %2259 = vmatprep.subr.bf16.mxu1 %v2455_v14 }
 0x8f7   :  { %v942_v41 = vpop.f32.mrb[12].mxu1 }
 0x8f8   :  { %v944_v42 = vpop.f32.mrb[13].mxu1  ;;  %v943_v48 = vadd.f32 %v942_v41, %v2610_v0 }
 0x8fb   :  { %v948_v43 = vpop.f32.mrb[14].mxu1 }
 0x8fc   :  { %v950_v47 = vpop.f32.mrb[15].mxu1 }
 0x8fd   :  { %v951_v51 = vadd.f32 %v950_v47, %v2612_v1 }
 0x8ff   :  { %v953_v53 = vadd.f32 %v951_v51, %v943_v48  ;;  %v959_v54 = vmul.f32 %v957_v52, %v951_v51 }
 0x901   :  { %v958_v55 = vmul.f32 %v957_v52, %v953_v53  ;;  %v961_v57 = vadd.f32 %v959_v54, %v790_v31 }
 0x903   :  { %v960_v56 = vadd.f32 %v958_v55, %v789_v29 }
 0x905   :  { %1504 = vst [vmem:[%s2845_s6 + $0x20] sm:$0xff] %v960_v56  ;;  %1865 = vmatprep.mubr.f32.mxu1 %v960_v56 }
 0x906   :  { %1866 = vmatmul.mubr.f32.vlgmr.msra.gmra.mrb[16].mxu1 %v961_v57 }
 0x907   :  { %2261 = vmatpush1.bf16.msra.mxu1 %v2513_v30  ;;  %1282 = vmatprep.mubr.f32.mxu1 %v2371_v44 }
 0x908   :  { %2263 = vmatprep.subr.bf16.mxu1 %v2523_v33 }
 0x90b   :  { %2265 = vmatpush1.bf16.msra.mxu1 %v2531_v36 }
 0x90c   :  { %2267 = vmatprep.subr.bf16.mxu1 %v2546_v40 }
 0x90f   :  { %2269 = vmatpush1.bf16.msra.mxu1 %v2559_v45 }
 0x910   :  { %2271 = vmatprep.subr.bf16.mxu1 %v2561_v46 }
 0x913   :  { %2273 = vmatpush1.bf16.msra.mxu1 %v2572_v49 }
 0x914   :  { %2275 = vmatprep.subr.bf16.mxu1 %v2419_v3 }
 0x9d9   :  { %v1867_v58 = vpop.f32.mrb[16].mxu1 }
 0x9da   :  { %v1030_v59 = vpop.f32.mrb[17].mxu1  ;;  %v1036_v61 = vadd.f32 %v1867_v58, %v2584_v50 }
 0x9db   :  { %v1031_v60 = vadd.f32 %v2584_v50, %v1030_v59 }
 0x9dd   :  { %2344 = vtanh.f32 %v1031_v60 }
 0x9de   :  { %2346 = vtanh.f32 %v1036_v61 }
 0x9e7   :  { %v2345_v62 = vpop.eup %2344 }
 0x9e8   :  { %1505 = vmatmul.mubr.msk.f32.vlgmr.msra.gmra.mrb[14].mxu0 %vm186_vm0, %v2345_v62  ;;  %v2347_v63 = vpop.eup %2346 }
 0x9e9   :  { %1117 = vmatprep.mubr.f32.mxu0 %v2371_v44  ;;  %2229 = vmatpush3.bf16.msra.mxu0 %v2419_v3 }
 0x9ea   :  { %2231 = vmatprep.subr.bf16.mxu0 %v2424_v5 }
 0x9ec   :  { %1506 = vmatmul.mubr.msk.f32.gmra.mrb[16].mxu0 %vm186_vm0, %v2347_v63 }
 0x9ed   :  { %2233 = vmatpush3.bf16.msra.mxu0 %v2424_v5 }
 0x9ee   :  { %2235 = vmatprep.subr.bf16.mxu0 %v2435_v8 }
 0x9f1   :  { %2237 = vmatpush3.bf16.msra.mxu0 %v2435_v8 }
 0x9f2   :  { %2239 = vmatprep.subr.bf16.mxu0 %v2459_v15 }
 0x9f5   :  { %2241 = vmatpush3.bf16.msra.mxu0 %v2459_v15 }
 0x9f6   :  { %2243 = vmatprep.subr.bf16.mxu0 %v2470_v18 }
 0x9f9   :  { %2245 = vmatpush3.bf16.msra.mxu0 %v2470_v18 }
 0x9fa   :  { %2247 = vmatprep.subr.bf16.mxu0 %v2480_v21 }
 0x9fd   :  { %2249 = vmatpush3.bf16.msra.mxu0 %v2480_v21 }
 0x9fe   :  { %2251 = vmatprep.subr.bf16.mxu0 %v2490_v24 }
 0xa01   :  { %2253 = vmatpush3.bf16.msra.mxu0 %v2490_v24 }
 0xa02   :  { %2255 = vmatprep.subr.bf16.mxu0 %v2500_v27 }
 0xa05   :  { %2257 = vmatpush3.bf16.msra.mxu0 %v2500_v27 }
 0xa06   :  { %2307 = vmatprep.subr.bf16.mxu0 %v2455_v14 }
 0xabb   :  { %v1113_v2 = vpop.f32.mrb[14].mxu0 }
 0xabc   :  { %v1115_v4 = vpop.f32.mrb[15].mxu0  ;;  %v1114_v10 = vadd.f32 %v1113_v2, %v2610_v0 }
 0xabf   :  { %v1119_v6 = vpop.f32.mrb[16].mxu0 }
 0xac0   :  { %v1121_v7 = vpop.f32.mrb[17].mxu0 }
 0xac1   :  { %v1122_v11 = vadd.f32 %v1121_v7, %v2612_v1 }
 0xac3   :  { %v1124_v13 = vadd.f32 %v1122_v11, %v1114_v10  ;;  %v1130_v16 = vmul.f32 %v1128_v12, %v1122_v11 }
 0xac5   :  { %v1129_v17 = vmul.f32 %v1128_v12, %v1124_v13  ;;  %v1132_v19 = vadd.f32 %v1130_v16, %v961_v57 }
 0xac7   :  { %v1131_v9 = vadd.f32 %v1129_v17, %v960_v56 }
 0xac9   :  { %1507 = vst [vmem:[%s2845_s6 + $0x28] sm:$0xff] %v1131_v9  ;;  %1900 = vmatprep.mubr.f32.mxu0 %v1131_v9 }
 0xaca   :  { %1901 = vmatmul.mubr.f32.vlgmr.msra.gmra.mrb[18].mxu0 %v1132_v19 }
 0xacb   :  { %2309 = vmatpush1.bf16.msra.mxu0 %v2513_v30  ;;  %1453 = vmatprep.mubr.f32.mxu0 %v2371_v44 }
 0xacc   :  { %2311 = vmatprep.subr.bf16.mxu0 %v2523_v33 }
 0xacf   :  { %2313 = vmatpush1.bf16.msra.mxu0 %v2531_v36 }
 0xad0   :  { %2315 = vmatprep.subr.bf16.mxu0 %v2546_v40  ;;  %v1299_v40 = vstv %s1489_s30 }
 0xad3   :  { %2317 = vmatpush1.bf16.msra.mxu0 %v2559_v45 }
 0xad4   :  { %2319 = vmatprep.subr.bf16.mxu0 %v2561_v46 }
 0xad7   :  { %2321 = vmatpush1.bf16.msra.mxu0 %v2572_v49 }
 0xb9d   :  { %v1902_v14 = vpop.f32.mrb[18].mxu0 }
 0xb9e   :  { %v1201_v20 = vpop.f32.mrb[19].mxu0  ;;  %v1207_v30 = vadd.f32 %v1902_v14, %v2584_v50 }
 0xb9f   :  { %v1202_v22 = vadd.f32 %v2584_v50, %v1201_v20 }
 0xba1   :  { %2348 = vtanh.f32 %v1202_v22 }
 0xba2   :  { %2350 = vtanh.f32 %v1207_v30 }
 0xbab   :  { %v2349_v23 = vpop.eup %2348 }
 0xbac   :  { %1508 = vmatmul.mubr.msk.f32.vlgmr.msra.gmra.mrb[18].mxu1 %vm186_vm0, %v2349_v23  ;;  %v2351_v33 = vpop.eup %2350 }
 0xbad   :  { %1288 = vmatprep.mubr.f32.mxu1 %v2371_v44  ;;  %2277 = vmatpush3.bf16.msra.mxu1 %v2419_v3 }
 0xbae   :  { %2279 = vmatprep.subr.bf16.mxu1 %v2424_v5 }
 0xbb0   :  { %1509 = vmatmul.mubr.msk.f32.gmra.mrb[20].mxu1 %vm186_vm0, %v2351_v33 }
 0xbb1   :  { %2281 = vmatpush3.bf16.msra.mxu1 %v2424_v5 }
 0xbb2   :  { %2283 = vmatprep.subr.bf16.mxu1 %v2435_v8 }
 0xbb5   :  { %2285 = vmatpush3.bf16.msra.mxu1 %v2435_v8 }
 0xbb6   :  { %2287 = vmatprep.subr.bf16.mxu1 %v2459_v15 }
 0xbb9   :  { %2289 = vmatpush3.bf16.msra.mxu1 %v2459_v15 }
 0xbba   :  { %2291 = vmatprep.subr.bf16.mxu1 %v2470_v18 }
 0xbbd   :  { %2293 = vmatpush3.bf16.msra.mxu1 %v2470_v18 }
 0xbbe   :  { %2295 = vmatprep.subr.bf16.mxu1 %v2480_v21 }
 0xbc1   :  { %2297 = vmatpush3.bf16.msra.mxu1 %v2480_v21 }
 0xbc2   :  { %2299 = vmatprep.subr.bf16.mxu1 %v2490_v24 }
 0xbc5   :  { %2301 = vmatpush3.bf16.msra.mxu1 %v2490_v24 }
 0xbc6   :  { %2303 = vmatprep.subr.bf16.mxu1 %v2500_v27 }
 0xbc9   :  { %2305 = vmatpush3.bf16.msra.mxu1 %v2500_v27 }
 0xc7f   :  { %v1284_v3 = vpop.f32.mrb[18].mxu1 }
 0xc80   :  { %v1286_v5 = vpop.f32.mrb[19].mxu1  ;;  %v1285_v36 = vadd.f32 %v1284_v3, %v2610_v0 }
 0xc83   :  { %v1290_v8 = vpop.f32.mrb[20].mxu1 }
 0xc84   :  { %v1292_v15 = vpop.f32.mrb[21].mxu1 }
 0xc85   :  { %v1293_v18 = vadd.f32 %v1292_v15, %v2612_v1 }
 0xc87   :  { %v1295_v45 = vadd.f32 %v1293_v18, %v1285_v36  ;;  %v1301_v21 = vmul.f32 %v1299_v40, %v1293_v18 }
 0xc89   :  { %v1300_v46 = vmul.f32 %v1299_v40, %v1295_v45  ;;  %v1303_v25 = vadd.f32 %v1301_v21, %v1132_v19 }
 0xc8b   :  { %v1302_v49 = vadd.f32 %v1300_v46, %v1131_v9 }
 0xc8d   :  { %1510 = vst [vmem:[%s2845_s6 + $0x30] sm:$0xff] %v1302_v49  ;;  %1935 = vmatprep.mubr.f32.mxu1 %v1302_v49 }
 0xc8e   :  { %1936 = vmatmul.mubr.f32.vlgmr.msra.gmra.mrb[22].mxu1 %v1303_v25 }
 0xd61   :  { %v1937_v24 = vpop.f32.mrb[22].mxu1 }
 0xd62   :  { %v1372_v27 = vpop.f32.mrb[23].mxu1  ;;  %v1378_v28 = vadd.f32 %v1937_v24, %v2584_v50 }
 0xd63   :  { %v1373_v26 = vadd.f32 %v2584_v50, %v1372_v27  ;;  %v1470_v50 = vstv %s1490_s9 }
 0xd65   :  { %2352 = vtanh.f32 %v1373_v26 }
 0xd66   :  { %2354 = vtanh.f32 %v1378_v28 }
 0xd6f   :  { %v2353_v29 = vpop.eup %2352 }
 0xd70   :  { %1511 = vmatmul.mubr.msk.f32.vlgmr.msra.gmra.mrb[20].mxu0 %vm186_vm0, %v2353_v29  ;;  %v2355_v31 = vpop.eup %2354 }
 0xd71   :  { %1459 = vmatprep.mubr.f32.mxu0 %v2371_v44 }
 0xd74   :  { %1512 = vmatmul.mubr.msk.f32.gmra.mrb[22].mxu0 %vm186_vm0, %v2355_v31 }
 0xe43   :  { %v1455_v32 = vpop.f32.mrb[20].mxu0 }
 0xe44   :  { %v1457_v34 = vpop.f32.mrb[21].mxu0  ;;  %v1456_v38 = vadd.f32 %v1455_v32, %v2610_v0 }
 0xe47   :  { %v1461_v35 = vpop.f32.mrb[22].mxu0 }
 0xe48   :  { %v1463_v37 = vpop.f32.mrb[23].mxu0 }
 0xe49   :  { %v1464_v39 = vadd.f32 %v1463_v37, %v2612_v1 }
 0xe4b   :  { %v1466_v41 = vadd.f32 %v1464_v39, %v1456_v38 }
 0xe4d   :  { %v1471_v42 = vmul.f32 %v1470_v50, %v1466_v41 }
 0xe4f   :  { %v1473_v43 = vadd.f32 %v1471_v42, %v1302_v49 }
 0xe51   :  { %1513 = vst [vmem:[%s2845_s6 + $0x38] sm:$0xff] %v1473_v43 }

</bundles_post_ra>
